<compile_context>
chip_gen: v7x
topology: tpu7x:2x2x1
jax: 0.10.0
libtpu: 0.0.40
codegen_flags: <defaults>
</compile_context>

<pallas_src>
import functools
import math

import jax
import jax.numpy as jnp
from jax.experimental import pallas as pl
from jax.experimental.pallas import tpu as pltpu


def _alibi_slopes(num_heads):
    # Matches get_alibi_slope: x = (2**8)**(1/H); slope_i = 1 / x**(i+1).
    x = (2.0 ** 8) ** (1.0 / num_heads)
    return [1.0 / (x ** (i + 1)) for i in range(num_heads)]


# ---------------------------------------------------------------------------
# Kernel 1: QKV projection + head split  (x (tm,E) @ W (E,3E) -> q/k/v (H,tm,d))
# ---------------------------------------------------------------------------
def _qkv_proj_kernel(x_ref, w_ref, q_ref, k_ref, v_ref, *, num_heads, inv_dk):
    tm, E = x_ref.shape
    H = num_heads
    d = E // H
    x = x_ref[...].astype(jnp.bfloat16)
    qkv = jnp.dot(x, w_ref[...], preferred_element_type=jnp.float32)   # (tm, 3E) f32
    # column order matches torch .chunk(3, -1): [key | query | value], head-major inside
    qkv = jnp.transpose(qkv.reshape(tm, 3 * H, d), (1, 0, 2))          # (3H, tm, d)
    k_ref[...] = qkv[0:H].astype(k_ref.dtype)
    q_ref[...] = (qkv[H:2 * H] * inv_dk).astype(q_ref.dtype)   # fold 1/sqrt(E) into q
    v_ref[...] = qkv[2 * H:3 * H].astype(v_ref.dtype)


def _qkv_projection(x, w_bf16, *, num_heads, seq_tile=None):
    B, S, E = x.shape
    H = num_heads
    d = E // H
    tm = min(S, 256) if seq_tile is None else seq_tile
    assert S % tm == 0
    inv_dk = 1.0 / math.sqrt(float(E))

    kernel = functools.partial(_qkv_proj_kernel, num_heads=H, inv_dk=inv_dk)

    qkv_sds = jax.ShapeDtypeStruct((B, H, S, d), jnp.bfloat16)
    qkv_spec = pl.BlockSpec((None, H, tm, d), lambda b, si: (b, 0, si, 0))

    cost = pl.CostEstimate(
        flops=2 * B * S * E * 3 * E,
        transcendentals=0,
        bytes_accessed=4 * B * S * E + 2 * E * 3 * E + 3 * 2 * B * S * E)

    per_step = 2 * (tm * E * 4 + E * 3 * E * 2 + 3 * H * tm * d * 2) + 8 * tm * 3 * E * 4
    params = pltpu.CompilerParams(
        dimension_semantics=("parallel", "parallel"),
        vmem_limit_bytes=int(min(max(2 * per_step, 32 << 20), 64 << 20)))

    return pl.pallas_call(
        kernel,
        out_shape=(qkv_sds, qkv_sds, qkv_sds),
        grid_spec=pltpu.PrefetchScalarGridSpec(
            num_scalar_prefetch=0,
            grid=(B, S // tm),
            in_specs=[pl.BlockSpec((None, tm, E), lambda b, si: (b, si, 0)),   # x slab
                      pl.BlockSpec((E, 3 * E), lambda b, si: (0, 0))],         # weight
            out_specs=[qkv_spec, qkv_spec, qkv_spec]),
        compiler_params=params,
        cost_estimate=cost,
    )(x, w_bf16)


# ---------------------------------------------------------------------------
# Kernel 2: flash-style ALiBi attention (heads batched in-kernel, kv-tiled grid)
# ---------------------------------------------------------------------------
def _flash_alibi_kernel(slope_ref, q_ref, k_ref, v_ref, out_ref, *rest,
                        causal, tq, tk, emit_attn):
    if emit_attn:
        attn_ref = rest[0]
        m_scr, l_scr, acc_scr = rest[1:]
    else:
        m_scr, l_scr, acc_scr = rest

    qi = pl.program_id(1)
    ki = pl.program_id(2)
    nk = pl.num_programs(2)

    @pl.when(ki == 0)
    def _init():
        m_scr[...] = jnp.full(m_scr.shape, -jnp.inf, m_scr.dtype)
        l_scr[...] = jnp.zeros(l_scr.shape, l_scr.dtype)
        acc_scr[...] = jnp.zeros(acc_scr.shape, acc_scr.dtype)

    def _update():
        # scores for all heads of this (q-tile, kv-tile): one batched MXU contraction
        s = jnp.einsum("hqd,hkd->hqk", q_ref[...], k_ref[...],
                       preferred_element_type=jnp.float32)              # (H, tq, tk) f32
        # ALiBi bias (+ causal mask folded in) built in-kernel from 2-D iotas.
        row = qi * tq + jax.lax.broadcasted_iota(jnp.int32, (tq, tk), 0)
        col = ki * tk + jax.lax.broadcasted_iota(jnp.int32, (tq, tk), 1)
        bias = slope_ref[...] * (col - row).astype(jnp.float32)[None, :, :]
        if causal:
            bias = jnp.where((col <= row)[None, :, :], bias, -jnp.inf)
        s = s + bias

        # online softmax (f32 statistics)
        m_prev = m_scr[...]
        m_new = jnp.maximum(m_prev, jnp.max(s, axis=-1, keepdims=True))
        p = jnp.exp(s - m_new)
        alpha = jnp.exp(m_prev - m_new)
        l_new = alpha * l_scr[...] + jnp.sum(p, axis=-1, keepdims=True)
        acc_scr[...] = alpha * acc_scr[...] + jnp.einsum(
            "hqk,hkd->hqd", p.astype(v_ref.dtype), v_ref[...],
            preferred_element_type=jnp.float32)
        m_scr[...] = m_new
        l_scr[...] = l_new

        if emit_attn:
            # emit_attn implies tk == S (single kv step), so l_new is the final
            # denominator; exact divide so emitted rows sum to 1.
            attn_ref[...] = (p / l_new).astype(attn_ref.dtype)

    if causal:
        pl.when(ki * tk < (qi + 1) * tq)(_update)   # skip fully-masked kv tiles
    else:
        _update()

    @pl.when(ki == nk - 1)
    def _finalize():
        H = acc_scr.shape[0]
        d = acc_scr.shape[2]
        ctx = acc_scr[...] / l_scr[...]                                  # (H, tq, d)
        # merge heads into a single lane-dense (tq, E) block
        out_ref[...] = jnp.transpose(ctx, (1, 0, 2)).reshape(tq, H * d).astype(out_ref.dtype)
        # dropout: eval-mode identity


def _flash_alibi_attention(q, k, v, slopes, *, causal, q_tile, kv_tile, return_attn):
    B, H, S, d = q.shape
    E = H * d
    tq = min(S, 128) if q_tile is None else q_tile
    if return_attn:
        tk = S            # attention-weights output needs the whole kv row per step
    else:
        tk = min(S, 128) if kv_tile is None else kv_tile
    assert S % tq == 0 and S % tk == 0
    nq, nk = S // tq, S // tk

    kernel = functools.partial(_flash_alibi_kernel, causal=causal, tq=tq, tk=tk,
                               emit_attn=return_attn)

    out_sds = jax.ShapeDtypeStruct((B, S, E), jnp.float32)
    out_spec = pl.BlockSpec((None, tq, E), lambda b, qi, ki: (b, qi, 0))
    if return_attn:
        out_shape = (out_sds, jax.ShapeDtypeStruct((B, H, S, S), jnp.float32))
        out_specs = [out_spec,
                     pl.BlockSpec((None, H, tq, S), lambda b, qi, ki: (b, 0, qi, 0))]
    else:
        out_shape = out_sds
        out_specs = out_spec

    in_specs = [
        pl.BlockSpec((H, 1, 1), lambda b, qi, ki: (0, 0, 0)),             # slopes
        pl.BlockSpec((None, H, tq, d), lambda b, qi, ki: (b, 0, qi, 0)),  # q
        pl.BlockSpec((None, H, tk, d), lambda b, qi, ki: (b, 0, ki, 0)),  # k
        pl.BlockSpec((None, H, tk, d), lambda b, qi, ki: (b, 0, ki, 0)),  # v
    ]
    scratch = [pltpu.VMEM((H, tq, 1), jnp.float32),    # m
               pltpu.VMEM((H, tq, 1), jnp.float32),    # l
               pltpu.VMEM((H, tq, d), jnp.float32)]    # acc

    cost = pl.CostEstimate(
        flops=4 * B * H * S * S * d,
        transcendentals=B * H * S * S,
        bytes_accessed=3 * 2 * B * H * S * d + 4 * B * S * E
        + (4 * B * H * S * S if return_attn else 0))

    per_step = (2 * H * tq * d * 2 + 4 * H * tk * d * 2 + 2 * tq * E * 4
                + (2 * H * tq * S * 4 if return_attn else 0)
                + H * tq * (2 + d) * 4 + 6 * H * tq * tk * 4)
    params = pltpu.CompilerParams(
        dimension_semantics=("parallel", "parallel", "arbitrary"),
        vmem_limit_bytes=int(min(max(2 * per_step, 32 << 20), 64 << 20)))

    result = pl.pallas_call(
        kernel,
        out_shape=out_shape,
        grid_spec=pltpu.PrefetchScalarGridSpec(
            num_scalar_prefetch=0,
            grid=(B, nq, nk),
            in_specs=in_specs,
            out_specs=out_specs,
            scratch_shapes=scratch),
        compiler_params=params,
        cost_estimate=cost,
    )(slopes, q, k, v)

    if return_attn:
        return result[0], result[1]
    return result, None


# ---------------------------------------------------------------------------
# Public wrapper: full ALiBi MHA forward
# ---------------------------------------------------------------------------
def alibi_mha_forward(x, w_qkv, *, num_heads, causal, q_tile=None, kv_tile=None,
                      proj_seq_tile=None, return_attn=True):
    """x: (B,S,E) f32.  w_qkv: (E,3E) f32 = torch Linear weight.T, columns [k|q|v].
    Returns (out (B,S,E) f32, attn (B,H,S,S) f32 or None)."""
    B, S, E = x.shape
    H = num_heads
    assert E % H == 0

    w_bf16 = w_qkv.astype(jnp.bfloat16)                    # one-time cast for the MXU
    q, k, v = _qkv_projection(x, w_bf16, num_heads=H, seq_tile=proj_seq_tile)
    slopes = jnp.array(_alibi_slopes(H), dtype=jnp.float32).reshape(H, 1, 1)
    return _flash_alibi_attention(q, k, v, slopes, causal=causal, q_tile=q_tile,
                                  kv_tile=kv_tile, return_attn=return_attn)


# ---------------------------------------------------------------------------
# Pure-JAX f32 reference (mirrors the PyTorch module exactly)
# ---------------------------------------------------------------------------
def alibi_mha_reference(x, w_qkv, *, num_heads, causal):
    B, S, E = x.shape
    H = num_heads
    d = E // H
    qkv = x @ w_qkv
    k, q, v = jnp.split(qkv, 3, axis=-1)

    def heads(t):
        return t.reshape(B, S, H, d).transpose(0, 2, 1, 3)   # (B,H,S,d)

    qh, kh, vh = heads(q), heads(k), heads(v)
    slopes = jnp.array(_alibi_slopes(H), dtype=jnp.float32)[None, :, None, None]
    rel = (jnp.arange(S)[None, :] - jnp.arange(S)[:, None]).astype(jnp.float32)
    score = jnp.einsum("bhqd,bhkd->bhqk", qh, kh) / math.sqrt(E) + slopes * rel
    if causal:
        keep = jnp.tril(jnp.ones((S, S), dtype=bool))
        score = jnp.where(keep, score, -jnp.inf)
    attn = jax.nn.softmax(score, axis=-1)
    ctx = jnp.einsum("bhqk,bhkd->bhqd", attn, vh)
    out = ctx.transpose(0, 2, 1, 3).reshape(B, S, E)
    return out, attn


# ---------------------------------------------------------------------------
if __name__ == "__main__":
    B, S, E, H = 2, 16, 32, 4        # batch=2, seq(block_size)=16, n_embd=32, heads=4

    key = jax.random.PRNGKey(0)
    kx, kw = jax.random.split(key)
    x = jax.random.normal(kx, (B, S, E), dtype=jnp.float32)
    w_qkv = 0.02 * jax.random.normal(kw, (E, 3 * E), dtype=jnp.float32)

    # Path 1: module-faithful output (per-head attention weights returned)
    for causal in (False, True):
        out, attn = alibi_mha_forward(x, w_qkv, num_heads=H, causal=causal,
                                      q_tile=8, return_attn=True)
        out = jax.block_until_ready(out)
        attn = jax.block_until_ready(attn)

        ref_out, ref_attn = alibi_mha_reference(x, w_qkv, num_heads=H, causal=causal)

        assert out.shape == (B, S, E)
        assert attn.shape == (B, H, S, S)
        # per-head list, matching the torch module's second return value
        attention_weights = [attn[:, h] for h in range(H)]
        assert len(attention_weights) == H
        assert all(a.shape == (B, S, S) for a in attention_weights)
        # exact-divide normalization -> rows sum to 1
        assert bool(jnp.allclose(jnp.sum(attn, axis=-1), 1.0, atol=1e-3))
        # matches pure-f32 reference up to bf16 matmul rounding
        assert bool(jnp.allclose(attn, ref_attn, atol=2e-2))
        assert bool(jnp.allclose(out, ref_out, atol=2e-2, rtol=1e-1))

    # Path 2: production path (no attn output) exercising the kv-tiled online softmax
    for causal in (False, True):
        out2, attn2 = alibi_mha_forward(x, w_qkv, num_heads=H, causal=causal,
                                        q_tile=8, kv_tile=8, proj_seq_tile=8,
                                        return_attn=False)
        out2 = jax.block_until_ready(out2)
        ref_out, _ = alibi_mha_reference(x, w_qkv, num_heads=H, causal=causal)
        assert attn2 is None
        assert bool(jnp.allclose(out2, ref_out, atol=2e-2, rtol=1e-1))

    print("KERNEL_OK")
</pallas_src>

<mosaic_0001>
module attributes {stable_mosaic.version = 11 : i64} {
  func.func @_qkv_proj_kernel(%arg0: i32, %arg1: i32, %arg2: memref<1x16x32xf32, #tpu.memory_space<vmem>>, %arg3: memref<32x96xbf16, #tpu.memory_space<vmem>>, %arg4: memref<1x4x16x8xbf16, #tpu.memory_space<vmem>>, %arg5: memref<1x4x16x8xbf16, #tpu.memory_space<vmem>>, %arg6: memref<1x4x16x8xbf16, #tpu.memory_space<vmem>>) attributes {dimension_semantics = [#tpu.dimension_semantics<parallel>, #tpu.dimension_semantics<parallel>], iteration_bounds = array<i64: 2, 1>, scalar_prefetch = 0 : i64, scratch_operands = 0 : i64, tpu.core_type = #tpu.core_type<tc>, window_params = [{transform_indices = @transform_0, window_bounds = array<i64: 1, 16, 32>}, {pipeline_mode = #tpu.pipeline_mode<synchronous>, transform_indices = @transform_1, window_bounds = array<i64: 32, 96>}, {transform_indices = @transform_2, window_bounds = array<i64: 1, 4, 16, 8>}, {transform_indices = @transform_3, window_bounds = array<i64: 1, 4, 16, 8>}, {transform_indices = @transform_4, window_bounds = array<i64: 1, 4, 16, 8>}]} {
    %c0 = arith.constant 0 : index
    %c0_0 = arith.constant 0 : index
    %c0_1 = arith.constant 0 : index
    %0 = vector.load %arg2[%c0, %c0_0, %c0_1] : memref<1x16x32xf32, #tpu.memory_space<vmem>>, vector<1x16x32xf32>
    %1 = vector.shape_cast %0 : vector<1x16x32xf32> to vector<16x32xf32>
    %2 = arith.truncf %1 : vector<16x32xf32> to vector<16x32xbf16>
    %c0_2 = arith.constant 0 : index
    %c0_3 = arith.constant 0 : index
    %3 = vector.load %arg3[%c0_2, %c0_3] : memref<32x96xbf16, #tpu.memory_space<vmem>>, vector<32x96xbf16>
    %cst = arith.constant dense<0.000000e+00> : vector<16x96xf32>
    %4 = tpu.matmul %2, %3, %cst {dimension_numbers = #tpu.dot_dimension_numbers<[1], [0], [0], [1], [0, 0, 1, 1], [], []>} : vector<16x32xbf16>, vector<32x96xbf16>, vector<16x96xf32> -> vector<16x96xf32>
    %5 = vector.shape_cast %4 : vector<16x96xf32> to vector<16x12x8xf32>
    %6 = tpu.transpose %5, [1, 0, 2] : vector<16x12x8xf32> -> vector<12x16x8xf32>
    %7 = vector.extract_strided_slice %6 {offsets = [0, 0, 0], sizes = [4, 16, 8], strides = [1, 1, 1]} : vector<12x16x8xf32> to vector<4x16x8xf32>
    %8 = arith.truncf %7 : vector<4x16x8xf32> to vector<4x16x8xbf16>
    %c0_4 = arith.constant 0 : index
    %c0_5 = arith.constant 0 : index
    %c0_6 = arith.constant 0 : index
    %c0_7 = arith.constant 0 : index
    %9 = vector.load %arg5[%c0_4, %c0_5, %c0_6, %c0_7] : memref<1x4x16x8xbf16, #tpu.memory_space<vmem>>, vector<1x4x16x8xbf16>
    %10 = vector.shape_cast %9 : vector<1x4x16x8xbf16> to vector<4x16x8xbf16>
    %11 = vector.shape_cast %8 : vector<4x16x8xbf16> to vector<1x4x16x8xbf16>
    tpu.vector_store %arg5[%c0_4, %c0_5, %c0_6, %c0_7], %11 {strides = array<i32>} : memref<1x4x16x8xbf16, #tpu.memory_space<vmem>>, vector<1x4x16x8xbf16>,
    %12 = vector.extract_strided_slice %6 {offsets = [4, 0, 0], sizes = [4, 16, 8], strides = [1, 1, 1]} : vector<12x16x8xf32> to vector<4x16x8xf32>
    %cst_8 = arith.constant 0.176776692 : f32
    %13 = vector.broadcast %cst_8 : f32 to vector<4x16x8xf32>
    %14 = arith.mulf %12, %13 : vector<4x16x8xf32>
    %15 = arith.truncf %14 : vector<4x16x8xf32> to vector<4x16x8xbf16>
    %c0_9 = arith.constant 0 : index
    %c0_10 = arith.constant 0 : index
    %c0_11 = arith.constant 0 : index
    %c0_12 = arith.constant 0 : index
    %16 = vector.load %arg4[%c0_9, %c0_10, %c0_11, %c0_12] : memref<1x4x16x8xbf16, #tpu.memory_space<vmem>>, vector<1x4x16x8xbf16>
    %17 = vector.shape_cast %16 : vector<1x4x16x8xbf16> to vector<4x16x8xbf16>
    %18 = vector.shape_cast %15 : vector<4x16x8xbf16> to vector<1x4x16x8xbf16>
    tpu.vector_store %arg4[%c0_9, %c0_10, %c0_11, %c0_12], %18 {strides = array<i32>} : memref<1x4x16x8xbf16, #tpu.memory_space<vmem>>, vector<1x4x16x8xbf16>,
    %19 = vector.extract_strided_slice %6 {offsets = [8, 0, 0], sizes = [4, 16, 8], strides = [1, 1, 1]} : vector<12x16x8xf32> to vector<4x16x8xf32>
    %20 = arith.truncf %19 : vector<4x16x8xf32> to vector<4x16x8xbf16>
    %c0_13 = arith.constant 0 : index
    %c0_14 = arith.constant 0 : index
    %c0_15 = arith.constant 0 : index
    %c0_16 = arith.constant 0 : index
    %21 = vector.load %arg6[%c0_13, %c0_14, %c0_15, %c0_16] : memref<1x4x16x8xbf16, #tpu.memory_space<vmem>>, vector<1x4x16x8xbf16>
    %22 = vector.shape_cast %21 : vector<1x4x16x8xbf16> to vector<4x16x8xbf16>
    %23 = vector.shape_cast %20 : vector<4x16x8xbf16> to vector<1x4x16x8xbf16>
    tpu.vector_store %arg6[%c0_13, %c0_14, %c0_15, %c0_16], %23 {strides = array<i32>} : memref<1x4x16x8xbf16, #tpu.memory_space<vmem>>, vector<1x4x16x8xbf16>,
    return
  }
  func.func @transform_0(%arg0: i32, %arg1: i32) -> (i32, i32, i32) {
    %c0_i32 = arith.constant 0 : i32
    %c0_i32_0 = arith.constant 0 : i32
    return %arg0, %arg1, %c0_i32 : i32, i32, i32
  }
  func.func @transform_1(%arg0: i32, %arg1: i32) -> (i32, i32) {
    %c0_i32 = arith.constant 0 : i32
    %c0_i32_0 = arith.constant 0 : i32
    %c0_i32_1 = arith.constant 0 : i32
    return %c0_i32, %c0_i32_0 : i32, i32
  }
  func.func @transform_2(%arg0: i32, %arg1: i32) -> (i32, i32, i32, i32) {
    %c0_i32 = arith.constant 0 : i32
    %c0_i32_0 = arith.constant 0 : i32
    %c0_i32_1 = arith.constant 0 : i32
    return %arg0, %c0_i32, %arg1, %c0_i32_0 : i32, i32, i32, i32
  }
  func.func @transform_3(%arg0: i32, %arg1: i32) -> (i32, i32, i32, i32) {
    %c0_i32 = arith.constant 0 : i32
    %c0_i32_0 = arith.constant 0 : i32
    %c0_i32_1 = arith.constant 0 : i32
    return %arg0, %c0_i32, %arg1, %c0_i32_0 : i32, i32, i32, i32
  }
  func.func @transform_4(%arg0: i32, %arg1: i32) -> (i32, i32, i32, i32) {
    %c0_i32 = arith.constant 0 : i32
    %c0_i32_0 = arith.constant 0 : i32
    %c0_i32_1 = arith.constant 0 : i32
    return %arg0, %c0_i32, %arg1, %c0_i32_0 : i32, i32, i32, i32
  }
}

</mosaic_0001>

<bundles_post_ra>
// kernel: tpu_custom_call.1
= control target key start
LH: loop header
LB: loop body
LE: loop exit
PB: predicated region body
PF: predicated region fallthrough
CT: control target
= control target key end

     0   :  { %10 = vsyncpa [#allocation3], 0  ;;  %s2347_s0 = inlined_call_operand.hbm [shape: f32[2,16,32], index: 0, kind: input, shape index: {}]   ;;  %s2348_s1 = inlined_call_operand.hbm [shape: bf16[32,96], index: 1, kind: input, shape index: {}]   ;;  %s2349_s2 = inlined_call_operand.vmem [shape: bf16[2,4,16,8], index: 2, kind: output, shape index: {0}]   ;;  %s2350_s3 = inlined_call_operand.vmem [shape: bf16[2,4,16,8], index: 3, kind: output, shape index: {1}]   ;;  %s2351_s4 = inlined_call_operand.vmem [shape: bf16[2,4,16,8], index: 4, kind: output, shape index: {2}]  }
   0x1   :  { %12 = vsyncpa [#allocation3 + $0x1], 0 }
   0x2   :  { %13 = vsyncpa [#allocation5], 0  ;;  %s1943_s15 = smov 0   ;;  %s1945_s16 = smov 0  }
   0x3   :  { %s1947_s17 = smov 0   ;;  %s1949_s18 = smov 0  }
   0x4   :  { %s1951_s19 = smov 0   ;;  %s1953_s20 = smov 0  }
   0x5 LB: > { %s1591_s21 = sadd.s32 4294967295, %s1895_s20   ;;  %p53_p0 = scmp.ne.s32.totalorder %s1879_s16, %s1875_s15  ;;  %s1895_s20 = sphi %s1953_s20, %s19_s20   ;;  %s1891_s19 = sphi %s1951_s19, %s2368_s19   ;;  %s1887_s18 = sphi %s1949_s18, %s2367_s18   ;;  %s1883_s17 = sphi %s1947_s17, %s2366_s17   ;;  %s1879_s16 = sphi %s1945_s16, %s2365_s16   ;;  %s1875_s15 = sphi %s1943_s15, %s2364_s15  }
   0x6   : > { %p1973_p1 = scmp.eq.s32.totalorder %s1591_s21, 0  ;;  %p1593_p2 = scmp.ge.s32.totalorder %s1895_s20, 1 }
   0x7   : > { %p169_p3 = scmp.lt.s32.totalorder %s1895_s20, 3  ;;  %s1897_s25 = smov [#allocation4]  }
   0x8   : > { %s2356_s22 = scalar_select %p1973_p1, 1, 0 }
   0x9   : > { %p1981_p4 = por %p1973_p1, %p53_p0  ;;  %p1985_p5 = pnand %p1593_p2, %p169_p3 }
   0xa   : > { %s181_s26 = sshll.u32 %s1897_s25, 4  ;;  %s31_s28 = sadd.s32 1, %s1891_s19  ;;  %s182_s26 = int_to_ptr.vmem [resolvable:$true] %s181_s26 }
   0xb   : > { %s2357_s23 = scalar_select %p1981_p4, 1, 0 }
   0xc   : > { %s2358_s24 = scalar_select %p1985_p5, 1, 0 }
   0xd   : > { %p1702_p6 = pneg %p1985_p5  ;;  %s1783_s5 = scalar_lea.hbm %s2348_s1, 256 }
   0xe   : > { %p1784_p8 = scmp.ne.s32.totalorder %s2348_s1, %s1783_s5  ;;  %p1790_p12 = scmp.lt.u32.totalorder %s1783_s5, %s2348_s1 }
   0xf   : > { %p1993_p7 = pnand %p1702_p6, %p1973_p1 }
  0x11   : > { %p1785_p9 = pneg %p1993_p7 }
  0x13   : > { %p1786_p10 = pnand %p1785_p9, %p1784_p8 }
  0x15   : > { %p1787_p11 = pneg %p1786_p10 }
  0x17   : > { %p1792_p13 = pnand %p1790_p12, %p1787_p11 }
  0x19   : > { %1795 = shalt.err (!%p1792_p13)
}
  0x1a   : > { %s1796_s10 = scalar_lea.vmem %s182_s26, 256  ;;  %p1804_p6 = scmp.lt.s32.totalorder %s182_s26, %s182_s26 }
  0x1b   : > { %p1797_p0 = scmp.ne.s32.totalorder %s182_s26, %s1796_s10  ;;  %p1805_p1 = scmp.lt.s32.totalorder %s1796_s10, %s1796_s10 }
  0x1d   : > { %p1799_p2 = pnand %p1797_p0, %p1785_p9  ;;  %p1806_p4 = por %p1805_p1, %p1804_p6 }
  0x1f   : > { %p1800_p3 = pneg %p1799_p2 }
  0x21   : > { %p1807_p5 = pnand %p1806_p4, %p1800_p3 }
  0x23   : > { %1810 = shalt.err (!%p1807_p5)
}
  0x24   : > { %s1898_s11 = smov 64   ;;  %s1899_s12 = smov 4  }
  0x25   : > { %1705 = dma.hbm_to_vmem [thread:$0]  (!%p1993_p7), %s2348_s1, 256, %s182_s26, [#allocation5], %s1898_s11, %s1898_s11, %s1899_s12  }
  0x26   : > { %p33_p1 = scmp.ge.s32.totalorder %s31_s28, 2  ;;  %s40_s15 = sadd.s32 1, %s1883_s17 }
  0x27   : > { %p47_p4 = scmp.ne.s32.totalorder %s1883_s17, %s1879_s16  ;;  %p48_p5 = scmp.eq.s32.totalorder %s1895_s20, 0 }
  0x28   : > { %s2370_s28 = smov (%p33_p1, %s31_s28), 0  ;;  %p1711_p9 = scmp.lt.s32.totalorder %s1895_s20, 2 }
  0x29   : > { %p49_p8 = por %p48_p5, %p47_p4  ;;  %s35_s21 = ssub.s32 %s1891_s19, %s2370_s28 }
  0x2a   : > { %s195_s25 = sand.u32 1, %s1883_s17   ;;  %p38_p10 = scmp.eq.s32.totalorder %s35_s21, 0 }
  0x2b   : > { %s1596_s29 = sshll.u32 %s195_s25, 4  ;;  %s1657_s30 = sshll.u32 %s1891_s19, 8 }
  0x2c   : > { %s2026_s5 = scalar_select %p38_p10, %s1883_s17, %s40_s15  }
  0x2d   : > { %s2031_s26 = scalar_lea.hbm %s2347_s0, %s1657_s30  ;;  %s199_s7 = scalar_lea.vmem [#allocation2], %s1596_s29 }
  0x2e   : > { %s208_s8 = sshll.u32 %s199_s7, 4  ;;  %p2033_p7 = pnand %p1711_p9, %p49_p8  ;;  %s2037_s8 = int_to_ptr.vmem [resolvable:$true] %s208_s8 }
  0x2f   : > { %s2039_s10 = scalar_lea.sflag [#allocation3], %s195_s25  ;;  %s1811_s11 = scalar_lea.hbm %s2031_s26, 256 }
  0x30   : > { %p1812_p11 = scmp.ne.s32.totalorder %s2031_s26, %s1811_s11  ;;  %p1813_p12 = pneg %p2033_p7 }
  0x31   : > { %s1816_s14 = scalar_lea.hbm %s2347_s0, 512  ;;  %p1817_p2 = scmp.lt.u32.totalorder %s2031_s26, %s2347_s0 }
  0x32   : > { %p1814_p13 = pnand %p1813_p12, %p1812_p11  ;;  %p1818_p3 = scmp.lt.u32.totalorder %s1816_s14, %s1811_s11 }
  0x33   : > { %p1820_p1 = scmp.lt.u32.totalorder %s1811_s11, %s2031_s26 }
  0x34   : > { %p1815_p0 = pneg %p1814_p13  ;;  %p1819_p6 = por %p1818_p3, %p1817_p2 }
  0x36   : > { %p1821_p4 = por %p1820_p1, %p1819_p6 }
  0x38   : > { %p1822_p5 = pnand %p1821_p4, %p1815_p0 }
  0x3a   : > { %1825 = shalt.err (!%p1822_p5)
}
  0x3b   : > { %s1826_s25 = scalar_lea.vmem %s2037_s8, 256  ;;  %s1900_s29 = smov [#allocation2]  }
  0x3c   : > { %p1827_p8 = scmp.ne.s32.totalorder %s2037_s8, %s1826_s25  ;;  %s1831_s30 = sshll.u32 %s1900_s29, 4  ;;  %s1832_s30 = int_to_ptr.vmem [resolvable:$false] %s1831_s30 }
  0x3d   : > { %s1833_s27 = scalar_lea.vmem %s1832_s30, 512  ;;  %p1834_p11 = scmp.lt.s32.totalorder %s2037_s8, %s1832_s30 }
  0x3e   : > { %p1829_p9 = pnand %p1827_p8, %p1813_p12  ;;  %p1835_p13 = scmp.lt.s32.totalorder %s1833_s27, %s1826_s25 }
  0x40   : > { %p1830_p10 = pneg %p1829_p9  ;;  %p1836_p2 = por %p1835_p13, %p1834_p11 }
  0x42   : > { %p1837_p3 = pnand %p1836_p2, %p1830_p10 }
  0x44   : > { %1840 = shalt.err (!%p1837_p3)
}
  0x45   : > { %s1901_s6 = smov 128   ;;  %s1902_s7 = smov 8  }
  0x46   : > { %1709 = dma.hbm_to_vmem [thread:$0]  (!%p2033_p7), %s2031_s26, 256, %s2037_s8, %s2039_s10, %s1901_s6, %s1901_s6, %s1902_s7  }
  0x47   : > { %p2361_p12 = scmp.ne.s32.totalorder %s2358_s24, 0 }
  0x48   : > { %s222_s11 = sand.u32 (!%p2361_p12), 1, %s1879_s16   ;;  %p2362_p0 = scmp.ne.s32.totalorder (!%p2361_p12), %s2357_s23, 0 }
  0x49   : > { %220 = sbr.rel (%p2361_p12) target bundleno = 507 (0x1fb), region = 28  ;;  %s1600_s12 = sshll.u32 (!%p2361_p12), %s222_s11, 4 }
  0x4a   : > { %s223_s13 = scalar_lea.sflag (!%p2361_p12), [#allocation3], %s222_s11  ;;  %s226_s14 = scalar_lea.vmem (!%p2361_p12), [#allocation2], %s1600_s12 }
  0x50   : > { %1866 = dma.done.wait (%p2362_p0), %s223_s13, 256  }
  0x51   : > { %1868 = vsyncadd (%p2362_p0), %s223_s13, 4294967040  ;;  %p2363_p6 = scmp.ne.s32.totalorder %s2356_s22, 0 }
  0x53   : > { %1870 = dma.done.wait (%p2363_p6), [#allocation5], 256  }
  0x54   : > { %1872 = vsyncadd (%p2363_p6), [#allocation5], 4294967040  ;;  %v1903_v0 = vmov 0.0   ;;  %vm1904_vm0 = vmmov 0   ;;  %v1781_v1 = vld [vmem:[#allocation4] sm:$0xff]   ;;  %v1782_v2 = vld [vmem:[#allocation4 + $0x8] sm:$0xff]   ;;  %v446_v12 = vlaneseq }
  0x55   : > { %1688 = vmatprep.subr.bf16.mxu0 %v1903_v0  ;;  %1692 = vmatprep.mubr.msk.bf16.mxu0 %vm1904_vm0, %v1903_v0  ;;  %v309_v3 = vld [vmem:[%s226_s14] sm:$0xff]  ;;  %v310_v4 = vld [vmem:[%s226_s14 + $0x8] sm:$0xff]  ;;  %vm328_vm1 = vcmask 261120   ;;  %s1905_s23 = smov 88   ;;  %s1906_s22 = smov 96   ;;  %vm1289_vm2 = vcmask 60416  }
  0x56   : > { %1689 = vmatpush3.bf16.msra.mxu0 %v1781_v1  ;;  %v311_v5 = vpack.c.bf16 %v310_v4, %v309_v3  ;;  %s1907_s24 = smov 80   ;;  %s1908_s26 = smov 72   ;;  %v1916_v10 = vmov 1983009808   ;;  %v1917_v15 = vmov 1934713408  }
  0x57   : > { %1690 = vmatprep.subr.bf16.mxu0 %v1903_v0  ;;  %s1909_s8 = smov 120   ;;  %s1910_s9 = smov 112   ;;  %v444_v11 = vunpack.c.l.s4 %v1916_v10  ;;  %v508_v16 = vunpack.c.l.s4 %v1917_v15  ;;  %v447_v18 = vshrl.u32 %v446_v12, 7 }
  0x58   : > { %s1911_s10 = smov 104   ;;  %s1912_s15 = smov 64  }
  0x59   : > { %s1913_s21 = smov 56   ;;  %s1914_s25 = smov 48   ;;  %v445_v17 = vunpack.c.0.s8 %v444_v11  ;;  %v509_v21 = vunpack.c.0.s8 %v508_v16 }
  0x5a   : > { %1691 = vmatpush3.bf16.msra.mxu0 %v1782_v2  ;;  %s1915_s29 = smov 40   ;;  %p279_p7 = scmp.lt.s32.totalorder %s1887_s18, 1 }
  0x5b   : > { %v2106_v22 = vsub.s32 %v445_v17, %v447_v18  ;;  %v2110_v29 = vsub.s32 %v509_v21, %v447_v18 }
  0x5c   : > { %s2372_s18 = smov (!%p279_p7, %s1887_s18), 1 }
  0x5d   : > { %1693 = vmatmul.mubr.msk.bf16.vlgmr.msra.gmra.mrb[0].mxu0 %vm328_vm1, %v311_v5  ;;  %s2150_s30 = sshll.u32 %s2372_s18, 5 }
  0x5e   : > { %s2157_s7 = scalar_lea.vmem %s2349_s2, %s2150_s30  ;;  %s2200_s12 = scalar_lea.vmem %s2350_s3, %s2150_s30 }
 0x130   : > { %v2078_v6 = vpop.f32.mrb[0].mxu0 }
 0x131   : > { %399 = vrot.lane.b32.xlu1 %v2078_v6, %s1905_s23  ;;  %393 = vrot.lane.b32.xlu0 %v2078_v6, %s1906_s22  ;;  %v1694_v7 = vpop.f32.mrb[1].mxu0 }
 0x132   : > { %v2083_v8 = vpop.f32.mrb[2].mxu0 }
 0x133   : > { %v1695_v9 = vpop.f32.mrb[3].mxu0 }
 0x135   : > { %405 = vrot.lane.b32.xlu0 %v2078_v6, %s1907_s24  ;;  %401 = vrot.lane.b32.xlu1 %v2083_v8, %s1905_s23  ;;  %s2283_s23 = scalar_lea.vmem %s2351_s4, %s2150_s30 }
 0x139   : > { %411 = vrot.lane.b32.xlu0 %v2078_v6, %s1908_s26  ;;  %407 = vrot.lane.b32.xlu1 %v2083_v8, %s1907_s24 }
 0x13d   : > { %375 = vrot.lane.b32.xlu0 %v2078_v6, %s1909_s8  ;;  %413 = vrot.lane.b32.xlu1 %v2083_v8, %s1908_s26 }
 0x141   : > { %381 = vrot.lane.b32.xlu0 %v2078_v6, %s1910_s9  ;;  %377 = vrot.lane.b32.xlu1 %v2083_v8, %s1909_s8 }
 0x145   : > { %387 = vrot.lane.b32.xlu0 %v2078_v6, %s1911_s10  ;;  %383 = vrot.lane.b32.xlu1 %v2083_v8, %s1910_s9 }
 0x149   : > { %417 = vrot.lane.b32.xlu0 %v2078_v6, %s1912_s15  ;;  %389 = vrot.lane.b32.xlu1 %v2083_v8, %s1911_s10 }
 0x14d   : > { %423 = vrot.lane.b32.xlu0 %v2078_v6, %s1913_s21  ;;  %419 = vrot.lane.b32.xlu1 %v2083_v8, %s1912_s15 }
 0x151   : > { %429 = vrot.lane.b32.xlu0 %v2078_v6, %s1914_s25  ;;  %425 = vrot.lane.b32.xlu1 %v2083_v8, %s1913_s21 }
 0x155   : > { %431 = vrot.lane.b32.xlu1 %v2083_v8, %s1914_s25  ;;  %395 = vrot.lane.b32.xlu0 %v2083_v8, %s1906_s22 }
 0x159   : > { %437 = vrot.lane.b32.xlu1 %v2083_v8, %s1915_s29  ;;  %435 = vrot.lane.b32.xlu0 %v2078_v6, %s1915_s29 }
 0x1a3   : > { %v400_v13 = vpop.permute.xlu1 %399  ;;  %v394_v14 = vpop.permute.xlu0 %393 }
 0x1a7   : > { %v406_v19 = vpop.permute.xlu0 %405  ;;  %v402_v20 = vpop.permute.xlu1 %401 }
 0x1a8   : > { %v473_v23 = vcombine.low %v394_v14, %v406_v19  ;;  %v474_v24 = vcombine.high %v394_v14, %v406_v19 }
 0x1aa   : > { %v481_v30 = vrot.slane %v473_v23, %v2106_v22  ;;  %v488_v31 = vrot.slane %v474_v24, %v2106_v22 }
 0x1ab   : > { %v412_v25 = vpop.permute.xlu0 %411  ;;  %v2108_v26 = vpop.permute.xlu1 %407 }
 0x1ac   : > { %v489_v27 = vcombine.low %v400_v13, %v412_v25  ;;  %v490_v28 = vcombine.high %v400_v13, %v412_v25 }
 0x1ae   : > { %v497_v32 = vrot.slane %v489_v27, %v2106_v22  ;;  %v504_v33 = vrot.slane %v490_v28, %v2106_v22 }
 0x1af   : > { %v376_v34 = vpop.permute.xlu0 %375  ;;  %v414_v35 = vpop.permute.xlu1 %413 }
 0x1b0   : > { %v537_v36 = vcombine.low %v481_v30, %v497_v32  ;;  %v538_v37 = vcombine.high %v481_v30, %v497_v32  ;;  %v553_v38 = vcombine.low %v488_v31, %v504_v33  ;;  %v554_v39 = vcombine.high %v488_v31, %v504_v33 }
 0x1b1   : > { %v693_v44 = vcombine.low %v402_v20, %v414_v35  ;;  %v694_v45 = vcombine.high %v402_v20, %v414_v35 }
 0x1b2   : > { %v545_v40 = vrot.slane %v537_v36, %v2110_v29  ;;  %v552_v41 = vrot.slane %v538_v37, %v2110_v29  ;;  %v561_v42 = vrot.slane %v553_v38, %v2110_v29  ;;  %v568_v43 = vrot.slane %v554_v39, %v2110_v29 }
 0x1b3   : > { %v382_v46 = vpop.permute.xlu0 %381  ;;  %v2120_v47 = vpop.permute.xlu1 %377  ;;  %v2130_v58 = vrot.slane %v693_v44, %v2106_v22  ;;  %v2133_v59 = vrot.slane %v694_v45, %v2106_v22 }
 0x1b4   : > { %v1612_v48 = vcombine.low %v545_v40, %v552_v41  ;;  %v1614_v49 = vcombine.high %v545_v40, %v552_v41  ;;  %v1616_v50 = vcombine.low %v561_v42, %v568_v43  ;;  %v1618_v51 = vcombine.high %v561_v42, %v568_v43 }
 0x1b5   : > { %v441_v52 = vcombine.low %v2078_v6, %v382_v46  ;;  %v442_v53 = vcombine.high %v2078_v6, %v382_v46 }
 0x1b6   : > { %v864_v54 = vrot.slane %v1612_v48, %v2106_v22  ;;  %v880_v55 = vrot.slane %v1614_v49, %v2106_v22  ;;  %v896_v56 = vrot.slane %v1616_v50, %v2106_v22  ;;  %v912_v57 = vrot.slane %v1618_v51, %v2106_v22 }
 0x1b7   : > { %v388_v60 = vpop.permute.xlu0 %387  ;;  %v384_v61 = vpop.permute.xlu1 %383  ;;  %v449_v2 = vrot.slane %v441_v52, %v2106_v22  ;;  %v456_v3 = vrot.slane %v442_v53, %v2106_v22 }
 0x1b8   : > { %v929_v62 = vcombine.low %v864_v54, %v880_v55  ;;  %v930_v63 = vcombine.high %v864_v54, %v880_v55  ;;  %v961_v0 = vcombine.low %v896_v56, %v912_v57  ;;  %v962_v1 = vcombine.high %v896_v56, %v912_v57 }
 0x1b9   : > { %v457_v4 = vcombine.low %v376_v34, %v388_v60  ;;  %v458_v5 = vcombine.high %v376_v34, %v388_v60  ;;  %v645_v13 = vcombine.low %v2083_v8, %v384_v61  ;;  %v646_v14 = vcombine.high %v2083_v8, %v384_v61 }
 0x1ba   : > { %v937_v6 = vrot.slane %v929_v62, %v2110_v29  ;;  %v944_v7 = vrot.slane %v930_v63, %v2110_v29  ;;  %v969_v9 = vrot.slane %v961_v0, %v2110_v29  ;;  %v976_v10 = vrot.slane %v962_v1, %v2110_v29 }
 0x1bb   : > { %v465_v11 = vrot.slane %v457_v4, %v2106_v22  ;;  %v472_v12 = vrot.slane %v458_v5, %v2106_v22  ;;  %v2148_v15 = vpop.permute.xlu0 %417  ;;  %v390_v16 = vpop.permute.xlu1 %389  ;;  %v653_v48 = vrot.slane %v645_v13, %v2106_v22 }
 0x1bc   : > { %v981_v17 = vcombine.low %v937_v6, %v969_v9  ;;  %v982_v18 = vcombine.high %v937_v6, %v969_v9  ;;  %v983_v19 = vcombine.low %v944_v7, %v976_v10  ;;  %v984_v20 = vcombine.high %v944_v7, %v976_v10 }
 0x1bd   : > { %v505_v21 = vcombine.low %v449_v2, %v465_v11  ;;  %v506_v23 = vcombine.high %v449_v2, %v465_v11  ;;  %v521_v24 = vcombine.low %v456_v3, %v472_v12  ;;  %v522_v25 = vcombine.high %v456_v3, %v472_v12 }
 0x1be   : > { %v1298_v27 = vmul.f32 0.17677669, %v981_v17  ;;  %v1300_v28 = vmul.f32 0.17677669, %v982_v18  ;;  %v1302_v30 = vmul.f32 0.17677669, %v983_v19  ;;  %v661_v31 = vcombine.low %v2120_v47, %v390_v16 }
 0x1bf   : > { %v1304_v8 = vmul.f32 0.17677669, %v984_v20  ;;  %v513_v32 = vrot.slane %v505_v21, %v2110_v29  ;;  %v520_v33 = vrot.slane %v506_v23, %v2110_v29  ;;  %v529_v34 = vrot.slane %v521_v24, %v2110_v29  ;;  %v2162_v35 = vpop.permute.xlu1 %419  ;;  %v2165_v40 = vpop.permute.xlu0 %423 }
 0x1c0   : > { %v1669_v36 = vpack.c.bf16 %v1298_v27, %v1298_v27  ;;  %v1671_v37 = vpack.c.bf16 %v1300_v28, %v1300_v28  ;;  %v1673_v38 = vpack.c.bf16 %v1302_v30, %v1302_v30  ;;  %v536_v39 = vrot.slane %v522_v25, %v2110_v29 }
 0x1c1   : > { %v1675_v41 = vpack.c.bf16 %v1304_v8, %v1304_v8  ;;  %v1611_v42 = vcombine.low %v513_v32, %v520_v33  ;;  %v1613_v43 = vcombine.high %v513_v32, %v520_v33  ;;  %v662_v44 = vcombine.high %v2120_v47, %v390_v16 }
 0x1c2   : > { %1338 = vst.msk [vmem:[%s2157_s7] sm:$0xf] %vm1289_vm2, %v1669_v36  ;;  %1340 = vst.msk [vmem:[%s2157_s7 + $0x8] sm:$0xf] %vm1289_vm2, %v1671_v37  ;;  %v1615_v45 = vcombine.low %v529_v34, %v536_v39  ;;  %v1617_v46 = vcombine.high %v529_v34, %v536_v39  ;;  %v669_v49 = vrot.slane %v661_v31, %v2106_v22 }
 0x1c3   : > { %1342 = vst.msk [vmem:[%s2157_s7 + $0x10] sm:$0xf] %vm1289_vm2, %v1673_v38  ;;  %1344 = vst.msk [vmem:[%s2157_s7 + $0x18] sm:$0xf] %vm1289_vm2, %v1675_v41  ;;  %v857_v50 = vrot.slane %v1611_v42, %v2106_v22  ;;  %v873_v51 = vrot.slane %v1613_v43, %v2106_v22  ;;  %v660_v47 = vrot.slane %v646_v14, %v2106_v22  ;;  %v2182_v53 = vpop.permute.xlu1 %425  ;;  %v430_v4 = vpop.permute.xlu0 %429 }
 0x1c4   : > { %v676_v52 = vrot.slane %v662_v44, %v2106_v22  ;;  %v889_v54 = vrot.slane %v1615_v45, %v2106_v22  ;;  %v905_v55 = vrot.slane %v1617_v46, %v2106_v22  ;;  %v709_v56 = vcombine.low %v653_v48, %v669_v49 }
 0x1c5   : > { %v710_v57 = vcombine.high %v653_v48, %v669_v49  ;;  %v913_v60 = vcombine.low %v857_v50, %v873_v51  ;;  %v914_v61 = vcombine.high %v857_v50, %v873_v51  ;;  %v577_v17 = vcombine.low %v2148_v15, %v430_v4 }
 0x1c6   : > { %v725_v62 = vcombine.low %v660_v47, %v676_v52  ;;  %v726_v63 = vcombine.high %v660_v47, %v676_v52  ;;  %v945_v0 = vcombine.low %v889_v54, %v905_v55  ;;  %v946_v1 = vcombine.high %v889_v54, %v905_v55 }
 0x1c7   : > { %v717_v2 = vrot.slane %v709_v56, %v2110_v29  ;;  %v724_v3 = vrot.slane %v710_v57, %v2110_v29  ;;  %v921_v5 = vrot.slane %v913_v60, %v2110_v29  ;;  %v928_v6 = vrot.slane %v914_v61, %v2110_v29  ;;  %v432_v19 = vpop.permute.xlu1 %431  ;;  %v396_v33 = vpop.permute.xlu0 %395 }
 0x1c8   : > { %v733_v7 = vrot.slane %v725_v62, %v2110_v29  ;;  %v740_v9 = vrot.slane %v726_v63, %v2110_v29  ;;  %v953_v10 = vrot.slane %v945_v0, %v2110_v29  ;;  %v960_v11 = vrot.slane %v946_v1, %v2110_v29 }
 0x1c9   : > { %v1619_v12 = vcombine.low %v717_v2, %v724_v3  ;;  %v1621_v13 = vcombine.high %v717_v2, %v724_v3  ;;  %v578_v18 = vcombine.high %v2148_v15, %v430_v4  ;;  %v2215_v39 = vrot.slane %v577_v17, %v2106_v22 }
 0x1ca   : > { %v1623_v14 = vcombine.low %v733_v7, %v740_v9  ;;  %v1625_v16 = vcombine.high %v733_v7, %v740_v9  ;;  %v977_v20 = vcombine.low %v921_v5, %v953_v10  ;;  %v978_v21 = vcombine.high %v921_v5, %v953_v10 }
 0x1cb   : > { %v979_v23 = vcombine.low %v928_v6, %v960_v11  ;;  %v980_v24 = vcombine.high %v928_v6, %v960_v11  ;;  %v993_v25 = vrot.slane %v1619_v12, %v2106_v22  ;;  %v1009_v27 = vrot.slane %v1621_v13, %v2106_v22  ;;  %v438_v49 = vpop.permute.xlu1 %437  ;;  %v2234_v63 = vpop.permute.xlu0 %435 }
 0x1cc   : > { %v1025_v15 = vrot.slane %v1623_v14, %v2106_v22  ;;  %v1041_v28 = vrot.slane %v1625_v16, %v2106_v22  ;;  %v1661_v30 = vpack.c.bf16 %v977_v20, %v977_v20  ;;  %v1663_v31 = vpack.c.bf16 %v978_v21, %v978_v21 }
 0x1cd   : > { %v1665_v8 = vpack.c.bf16 %v979_v23, %v979_v23  ;;  %v1667_v32 = vpack.c.bf16 %v980_v24, %v980_v24  ;;  %v1049_v34 = vcombine.low %v993_v25, %v1009_v27  ;;  %v1050_v36 = vcombine.high %v993_v25, %v1009_v27 }
 0x1ce   : > { %v1081_v37 = vcombine.low %v1025_v15, %v1041_v28  ;;  %v1082_v38 = vcombine.high %v1025_v15, %v1041_v28  ;;  %1290 = vst.msk [vmem:[%s2200_s12] sm:$0xf] %vm1289_vm2, %v1661_v30  ;;  %1292 = vst.msk [vmem:[%s2200_s12 + $0x8] sm:$0xf] %vm1289_vm2, %v1663_v31  ;;  %v2218_v41 = vrot.slane %v578_v18, %v2106_v22 }
 0x1cf   : > { %1294 = vst.msk [vmem:[%s2200_s12 + $0x10] sm:$0xf] %vm1289_vm2, %v1665_v8  ;;  %1296 = vst.msk [vmem:[%s2200_s12 + $0x18] sm:$0xf] %vm1289_vm2, %v1667_v32  ;;  %v781_v42 = vcombine.low %v2162_v35, %v432_v19  ;;  %v782_v43 = vcombine.high %v2162_v35, %v432_v19  ;;  %v1057_v44 = vrot.slane %v1049_v34, %v2110_v29 }
 0x1d0   : > { %v1064_v45 = vrot.slane %v1050_v36, %v2110_v29  ;;  %v1089_v46 = vrot.slane %v1081_v37, %v2110_v29  ;;  %v1096_v48 = vrot.slane %v1082_v38, %v2110_v29  ;;  %v677_v47 = vcombine.low %v396_v33, %v2108_v26 }
 0x1d1   : > { %v789_v50 = vrot.slane %v781_v42, %v2106_v22  ;;  %v796_v51 = vrot.slane %v782_v43, %v2106_v22  ;;  %v678_v52 = vcombine.high %v396_v33, %v2108_v26  ;;  %v797_v61 = vcombine.low %v2182_v53, %v438_v49 }
 0x1d2   : > { %v1113_v54 = vcombine.low %v1057_v44, %v1089_v46  ;;  %v1114_v55 = vcombine.high %v1057_v44, %v1089_v46  ;;  %v1115_v35 = vcombine.low %v1064_v45, %v1096_v48  ;;  %v1116_v56 = vcombine.high %v1064_v45, %v1096_v48 }
 0x1d3   : > { %v685_v57 = vrot.slane %v677_v47, %v2106_v22  ;;  %v692_v60 = vrot.slane %v678_v52, %v2106_v22  ;;  %v798_v62 = vcombine.high %v2182_v53, %v438_v49  ;;  %v805_v53 = vrot.slane %v797_v61, %v2106_v22 }
 0x1d4   : > { %v1662_v0 = vpack.c.bf16 %v1113_v54, %v1113_v54  ;;  %v1664_v26 = vpack.c.bf16 %v1114_v55, %v1114_v55  ;;  %v1666_v1 = vpack.c.bf16 %v1115_v35, %v1115_v35  ;;  %v1668_v2 = vpack.c.bf16 %v1116_v56, %v1116_v56 }
 0x1d5   : > { %v741_v3 = vcombine.low %v685_v57, %v2130_v58  ;;  %v742_v4 = vcombine.high %v685_v57, %v2130_v58  ;;  %v757_v5 = vcombine.low %v692_v60, %v2133_v59  ;;  %v758_v6 = vcombine.high %v692_v60, %v2133_v59 }
 0x1d6   : > { %1291 = vst.msk [vmem:[%s2200_s12 + $0x4] sm:$0xf] %vm1289_vm2, %v1662_v0  ;;  %1293 = vst.msk [vmem:[%s2200_s12 + $0xc] sm:$0xf] %vm1289_vm2, %v1664_v26  ;;  %v812_v7 = vrot.slane %v798_v62, %v2106_v22  ;;  %v593_v9 = vcombine.low %v2165_v40, %v2234_v63  ;;  %v594_v58 = vcombine.high %v2165_v40, %v2234_v63 }
 0x1d7   : > { %1295 = vst.msk [vmem:[%s2200_s12 + $0x14] sm:$0xf] %vm1289_vm2, %v1666_v1  ;;  %1297 = vst.msk [vmem:[%s2200_s12 + $0x1c] sm:$0xf] %vm1289_vm2, %v1668_v2  ;;  %v749_v59 = vrot.slane %v741_v3, %v2110_v29  ;;  %v756_v10 = vrot.slane %v742_v4, %v2110_v29  ;;  %v765_v11 = vrot.slane %v757_v5, %v2110_v29 }
 0x1d8   : > { %v772_v12 = vrot.slane %v758_v6, %v2110_v29  ;;  %v813_v13 = vcombine.low %v789_v50, %v805_v53  ;;  %v814_v14 = vcombine.high %v789_v50, %v805_v53  ;;  %v829_v16 = vcombine.low %v796_v51, %v812_v7 }
 0x1d9   : > { %v830_v17 = vcombine.high %v796_v51, %v812_v7  ;;  %v1620_v18 = vcombine.low %v749_v59, %v756_v10  ;;  %v1622_v19 = vcombine.high %v749_v59, %v756_v10  ;;  %v601_v4 = vrot.slane %v593_v9, %v2106_v22 }
 0x1da   : > { %v1624_v20 = vcombine.low %v765_v11, %v772_v12  ;;  %v1626_v21 = vcombine.high %v765_v11, %v772_v12  ;;  %v821_v23 = vrot.slane %v813_v13, %v2110_v29  ;;  %v828_v24 = vrot.slane %v814_v14, %v2110_v29 }
 0x1db   : > { %v837_v25 = vrot.slane %v829_v16, %v2110_v29  ;;  %v844_v27 = vrot.slane %v830_v17, %v2110_v29  ;;  %v1000_v15 = vrot.slane %v1620_v18, %v2106_v22  ;;  %v1016_v28 = vrot.slane %v1622_v19, %v2106_v22 }
 0x1dc   : > { %v1032_v30 = vrot.slane %v1624_v20, %v2106_v22  ;;  %v1048_v31 = vrot.slane %v1626_v21, %v2106_v22  ;;  %v1189_v8 = vcombine.low %v821_v23, %v828_v24  ;;  %v1629_v32 = vcombine.high %v821_v23, %v828_v24 }
 0x1dd   : > { %v1205_v33 = vcombine.low %v837_v25, %v844_v27  ;;  %v1630_v34 = vcombine.high %v837_v25, %v844_v27  ;;  %v1065_v36 = vcombine.low %v1000_v15, %v1016_v28  ;;  %v1066_v37 = vcombine.high %v1000_v15, %v1016_v28 }
 0x1de   : > { %v1097_v38 = vcombine.low %v1032_v30, %v1048_v31  ;;  %v1098_v42 = vcombine.high %v1032_v30, %v1048_v31  ;;  %v1196_v43 = vrot.slane %v1189_v8, %v2106_v22  ;;  %v1204_v44 = vrot.slane %v1629_v32, %v2106_v22 }
 0x1df   : > { %v1212_v45 = vrot.slane %v1205_v33, %v2106_v22  ;;  %v1220_v46 = vrot.slane %v1630_v34, %v2106_v22  ;;  %v1073_v48 = vrot.slane %v1065_v36, %v2110_v29  ;;  %v1080_v49 = vrot.slane %v1066_v37, %v2110_v29 }
 0x1e0   : > { %v1105_v50 = vrot.slane %v1097_v38, %v2110_v29  ;;  %v1112_v51 = vrot.slane %v1098_v42, %v2110_v29  ;;  %v1221_v47 = vcombine.low %v1196_v43, %v1204_v44  ;;  %v1222_v52 = vcombine.high %v1196_v43, %v1204_v44 }
 0x1e1   : > { %v1237_v54 = vcombine.low %v1212_v45, %v1220_v46  ;;  %v1238_v55 = vcombine.high %v1212_v45, %v1220_v46  ;;  %v608_v18 = vrot.slane %v594_v58, %v2106_v22  ;;  %v609_v19 = vcombine.low %v2215_v39, %v601_v4 }
 0x1e2   : > { %v1117_v35 = vcombine.low %v1073_v48, %v1105_v50  ;;  %v1118_v56 = vcombine.high %v1073_v48, %v1105_v50  ;;  %v1119_v57 = vcombine.low %v1080_v49, %v1112_v51  ;;  %v1120_v60 = vcombine.high %v1080_v49, %v1112_v51 }
 0x1e3   : > { %v1229_v61 = vrot.slane %v1221_v47, %v2110_v29  ;;  %v1236_v62 = vrot.slane %v1222_v52, %v2110_v29  ;;  %v1245_v0 = vrot.slane %v1237_v54, %v2110_v29  ;;  %v1252_v26 = vrot.slane %v1238_v55, %v2110_v29 }
 0x1e4   : > { %v1299_v1 = vmul.f32 0.17677669, %v1117_v35  ;;  %v1301_v2 = vmul.f32 0.17677669, %v1118_v56  ;;  %v1303_v3 = vmul.f32 0.17677669, %v1119_v57  ;;  %v610_v20 = vcombine.high %v2215_v39, %v601_v4 }
 0x1e5   : > { %v1305_v5 = vmul.f32 0.17677669, %v1120_v60  ;;  %v1253_v6 = vcombine.low %v1229_v61, %v1245_v0  ;;  %v1254_v53 = vcombine.high %v1229_v61, %v1245_v0  ;;  %v1255_v7 = vcombine.low %v1236_v62, %v1252_v26 }
 0x1e6   : > { %v1670_v59 = vpack.c.bf16 %v1299_v1, %v1299_v1  ;;  %v1672_v10 = vpack.c.bf16 %v1301_v2, %v1301_v2  ;;  %v1674_v11 = vpack.c.bf16 %v1303_v3, %v1303_v3  ;;  %v1256_v12 = vcombine.high %v1236_v62, %v1252_v26 }
 0x1e7   : > { %v1676_v9 = vpack.c.bf16 %v1305_v5, %v1305_v5  ;;  %v1678_v13 = vpack.c.bf16 %v1253_v6, %v1253_v6  ;;  %v1680_v14 = vpack.c.bf16 %v1254_v53, %v1254_v53  ;;  %v1682_v16 = vpack.c.bf16 %v1255_v7, %v1255_v7 }
 0x1e8   : > { %1339 = vst.msk [vmem:[%s2157_s7 + $0x4] sm:$0xf] %vm1289_vm2, %v1670_v59  ;;  %1341 = vst.msk [vmem:[%s2157_s7 + $0xc] sm:$0xf] %vm1289_vm2, %v1672_v10  ;;  %v1684_v17 = vpack.c.bf16 %v1256_v12, %v1256_v12  ;;  %v617_v21 = vrot.slane %v609_v19, %v2110_v29  ;;  %v624_v23 = vrot.slane %v610_v20, %v2110_v29 }
 0x1e9   : > { %1343 = vst.msk [vmem:[%s2157_s7 + $0x14] sm:$0xf] %vm1289_vm2, %v1674_v11  ;;  %1345 = vst.msk [vmem:[%s2157_s7 + $0x1c] sm:$0xf] %vm1289_vm2, %v1676_v9  ;;  %v625_v40 = vcombine.low %v2218_v41, %v608_v18  ;;  %v626_v63 = vcombine.high %v2218_v41, %v608_v18 }
 0x1ea   : > { %1379 = vst.msk [vmem:[%s2283_s23 + $0x4] sm:$0xf] %vm1289_vm2, %v1678_v13  ;;  %1381 = vst.msk [vmem:[%s2283_s23 + $0xc] sm:$0xf] %vm1289_vm2, %v1680_v14  ;;  %v1121_v24 = vcombine.low %v617_v21, %v624_v23  ;;  %v1627_v25 = vcombine.high %v617_v21, %v624_v23 }
 0x1eb   : > { %1383 = vst.msk [vmem:[%s2283_s23 + $0x14] sm:$0xf] %vm1289_vm2, %v1682_v16  ;;  %1385 = vst.msk [vmem:[%s2283_s23 + $0x1c] sm:$0xf] %vm1289_vm2, %v1684_v17  ;;  %v633_v39 = vrot.slane %v625_v40, %v2110_v29  ;;  %v640_v58 = vrot.slane %v626_v63, %v2110_v29 }
 0x1ec   : > { %v1128_v27 = vrot.slane %v1121_v24, %v2106_v22  ;;  %v1136_v15 = vrot.slane %v1627_v25, %v2106_v22 }
 0x1ed   : > { %v1137_v28 = vcombine.low %v633_v39, %v640_v58  ;;  %v1628_v30 = vcombine.high %v633_v39, %v640_v58 }
 0x1ee   : > { %v1153_v32 = vcombine.low %v1128_v27, %v1136_v15  ;;  %v1154_v33 = vcombine.high %v1128_v27, %v1136_v15 }
 0x1ef   : > { %v1144_v31 = vrot.slane %v1137_v28, %v2106_v22  ;;  %v1152_v8 = vrot.slane %v1628_v30, %v2106_v22 }
 0x1f0   : > { %v1161_v41 = vrot.slane %v1153_v32, %v2110_v29  ;;  %v1168_v34 = vrot.slane %v1154_v33, %v2110_v29 }
 0x1f1   : > { %v1169_v36 = vcombine.low %v1144_v31, %v1152_v8  ;;  %v1170_v37 = vcombine.high %v1144_v31, %v1152_v8 }
 0x1f3   : > { %v1177_v38 = vrot.slane %v1169_v36, %v2110_v29  ;;  %v1184_v42 = vrot.slane %v1170_v37, %v2110_v29 }
 0x1f5   : > { %v1185_v43 = vcombine.low %v1161_v41, %v1177_v38  ;;  %v1186_v44 = vcombine.high %v1161_v41, %v1177_v38  ;;  %v1187_v45 = vcombine.low %v1168_v34, %v1184_v42  ;;  %v1188_v22 = vcombine.high %v1168_v34, %v1184_v42 }
 0x1f7   : > { %v1677_v46 = vpack.c.bf16 %v1185_v43, %v1185_v43  ;;  %v1679_v48 = vpack.c.bf16 %v1186_v44, %v1186_v44  ;;  %v1681_v49 = vpack.c.bf16 %v1187_v45, %v1187_v45  ;;  %v1683_v50 = vpack.c.bf16 %v1188_v22, %v1188_v22 }
 0x1f9   : > { %1378 = vst.msk [vmem:[%s2283_s23] sm:$0xf] %vm1289_vm2, %v1677_v46  ;;  %1380 = vst.msk [vmem:[%s2283_s23 + $0x8] sm:$0xf] %vm1289_vm2, %v1679_v48 }
 0x1fa   : > { %1382 = vst.msk [vmem:[%s2283_s23 + $0x10] sm:$0xf] %vm1289_vm2, %v1681_v49  ;;  %1384 = vst.msk [vmem:[%s2283_s23 + $0x18] sm:$0xf] %vm1289_vm2, %v1683_v50 }
 0x1fb PF: > { %s19_s20 = sadd.s32 1, %s1895_s20   ;;  %s2364_s15 = smov %s1879_s16 }
 0x1fc   : > { %p16_p1 = scmp.ge.s32.totalorder %s19_s20, 4   ;;  %s2365_s16 = smov %s1883_s17 }
 0x1fd   : > { %s2366_s17 = smov %s2026_s5  ;;  %s2367_s18 = smov %s1891_s19 }
 0x1fe   : > { %s2368_s19 = smov %s2370_s28  ;;  %18 = sbr.rel (!%p16_p1) target bundleno = 5 (0x5), region = 96 }
 0x205   :  { %1466 = vsyncpa [#allocation3], 1 }
 0x206   :  { %1468 = vsyncpa [#allocation3 + $0x1], 1 }
 0x207   :  { %1469 = vsyncpa [#allocation5], 1 }

</bundles_post_ra>
